<compile_context>
chip_gen: v7x
topology: tpu7x:2x2x1
jax: 0.10.0
libtpu: 0.0.40
codegen_flags: <defaults>
</compile_context>

<pallas_src>
import functools

import jax
import jax.numpy as jnp
from jax.experimental import pallas as pl
from jax.experimental.pallas import tpu as pltpu


def _patch_merging_kernel(*refs, eps, dot_dtype, fuse_k, flat_out):
    if fuse_k:
        x_ref, w_ref, b_ref, o_ref = refs
    else:
        x_ref, we_ref, wo_ref, b_ref, o_ref = refs

    th, _, wp, c2 = x_ref.shape
    e2 = b_ref.shape[-1]
    rows = th * wp

    # Slice the Ref (not a loaded value): even / odd input rows of each 2x2
    # block.  The last dim already holds the (w-even, w-odd) channel pair.
    xe = x_ref[:, 0, :, :].reshape(rows, c2)
    xo = x_ref[:, 1, :, :].reshape(rows, c2)

    if fuse_k:
        # Small C: a single full-depth K=4C MXU push instead of two
        # half-filled K=2C pushes.
        z = jnp.concatenate([xe, xo], axis=-1).astype(jnp.float32)   # (rows, 4C)
        mean = jnp.mean(z, axis=-1, keepdims=True)
        d = z - mean
        var = jnp.mean(d * d, axis=-1, keepdims=True)
        rstd = jax.lax.rsqrt(var + eps)
        n = (d * rstd).astype(dot_dtype)
        acc = jnp.dot(n, w_ref[...], preferred_element_type=jnp.float32)
    else:
        xe = xe.astype(jnp.float32)
        xo = xo.astype(jnp.float32)
        inv_n = 1.0 / (2.0 * c2)                       # 1 / (4*dim)
        mean = (jnp.sum(xe, axis=-1, keepdims=True)
                + jnp.sum(xo, axis=-1, keepdims=True)) * inv_n
        de = xe - mean
        do = xo - mean
        var = (jnp.sum(de * de, axis=-1, keepdims=True)
               + jnp.sum(do * do, axis=-1, keepdims=True)) * inv_n
        rstd = jax.lax.rsqrt(var + eps)
        ne = (de * rstd).astype(dot_dtype)
        no = (do * rstd).astype(dot_dtype)
        # concat([ne,no]) @ W' == ne @ W'[:2C] + no @ W'[2C:]  (no lane concat)
        acc = jnp.dot(ne, we_ref[...], preferred_element_type=jnp.float32)
        acc = acc + jnp.dot(no, wo_ref[...], preferred_element_type=jnp.float32)

    acc = acc + b_ref[...]        # folded LayerNorm-beta contribution (f32)

    if flat_out:
        o_ref[...] = acc.reshape(th, wp * e2).astype(o_ref.dtype)
    else:
        o_ref[...] = acc.reshape(th, wp, e2).astype(o_ref.dtype)


def _choose_block_rows(m1, max_rows):
    """Largest divisor of m1 that is <= max_rows, preferring an even grid."""
    max_rows = int(max(1, min(max_rows, m1)))
    divs = [d for d in range(1, max_rows + 1) if m1 % d == 0]
    best = max(divs)
    # Prefer a >=2-long, even-length grid (v7x: 2 TensorCores share the
    # "parallel" axis) as long as it keeps at least half the tile size.
    for d in sorted(divs, reverse=True):
        g = m1 // d
        if g >= 2 and g % 2 == 0 and 2 * d >= best:
            return d
    return best


def patch_merging_2d(x, gamma, beta, w_reduction, *, eps=1e-5,
                     mxu_dtype=jnp.bfloat16, block_rows=None):
    """PatchMerging2D.forward.

    Args:
      x:           (B, H, W, C) NHWC features (H, W even).  Pass bf16
                   activations for the bandwidth win on v6e/v7x (output keeps
                   x.dtype).
      gamma, beta: (4*C,)  LayerNorm(4*C) affine parameters.
      w_reduction: (2*C, 4*C)  nn.Linear(4*C, 2*C, bias=False) weight (out, in).
      eps:         LayerNorm epsilon.
      mxu_dtype:   matmul operand dtype (bf16 default; f32 for exact math).
      block_rows:  optional override of output row-groups per grid step.
    Returns:
      (B, H//2, W//2, 2*C), dtype of x.
    """
    B, H, W, C = x.shape
    # TODO(synk): odd-H/W crop path (SHAPE_FIX) not implemented; even sizes only.
    assert H % 2 == 0 and W % 2 == 0, "PatchMerging2D kernel requires even H, W"
    Hp, Wp = H // 2, W // 2
    c2, c4, e2 = 2 * C, 4 * C, 2 * C
    assert gamma.shape == (c4,) and beta.shape == (c4,)
    assert w_reduction.shape == (e2, c4)

    # ---- copy-free activation relayout: (B,H,W,C) -> (B*Hp, 2, Wp, 2C) -----
    xr = x.reshape(B * Hp, 2, Wp, c2)
    M1 = B * Hp

    # ---- parameter prep (tiny, once, outside the kernel) -------------------
    # PyTorch concat order along 4C is (kw, kh, c); the copy-free relayout
    # yields (kh, kw, c).  Permute the parameters, not the activations
    # (LayerNorm statistics are permutation-invariant).
    def _perm(v):
        return v.reshape(2, 2, C).transpose(1, 0, 2).reshape(c4)

    gk = _perm(gamma.astype(jnp.float32))
    bk = _perm(beta.astype(jnp.float32))
    wk = (w_reduction.astype(jnp.float32).T
          .reshape(2, 2, C, e2).transpose(1, 0, 2, 3).reshape(c4, e2))
    # Fold LayerNorm affine into the matmul: y = (d*rstd) @ (diag(g)W) + b@W.
    w_fold = gk[:, None] * wk                       # (4C, 2C) f32
    bias = (bk @ wk).reshape(1, e2).astype(jnp.float32)

    fuse_k = c4 <= 256          # small C: one full-depth K=4C MXU push
    if fuse_k:
        weights = (w_fold.astype(mxu_dtype),)
    else:
        weights = (w_fold[:c2].astype(mxu_dtype),
                   w_fold[c2:].astype(mxu_dtype))

    # ---- tile sizing: honest VMEM accounting, per-generation budget --------
    in_item = x.dtype.itemsize
    out_item = x.dtype.itemsize
    try:
        vmem_cap = int(pltpu.get_tpu_info().vmem_capacity_bytes)
    except Exception:
        vmem_cap = 64 * 1024 * 1024                 # conservative fallback
    vmem_limit = max(32 * 1024 * 1024,
                     min(int(0.80 * vmem_cap), 100 * 1024 * 1024))
    budget = int(0.75 * vmem_limit)                 # headroom for the compiler

    weight_bytes = 2 * (sum(int(w.size) * w.dtype.itemsize for w in weights)
                        + int(bias.size) * 4)       # assume double-buffered
    in_row = 2 * Wp * c2 * in_item                  # input bytes per row-group
    out_row = Wp * e2 * out_item
    f32_row = Wp * (20 * c2 + 4 * e2)               # in-kernel f32/bf16 temps
    per_row = 2 * in_row + 2 * out_row + f32_row    # double-buffered tiles
    max_rows = max(1, min((8 * 1024 * 1024) // max(1, in_row),
                          (budget - weight_bytes) // max(1, per_row)))

    if block_rows is None:
        block_rows = _choose_block_rows(M1, max_rows)
    else:
        block_rows = _choose_block_rows(M1, block_rows)   # snap to a divisor
    grid = (M1 // block_rows,)

    # Lane-dense stores only possible when the flat block obeys the (8, 128)
    # constraint on its second-to-minor dim.
    want_flat = (e2 % 128 != 0) and (block_rows % 8 == 0 or block_rows == M1)

    M = M1 * Wp
    cost = pl.CostEstimate(
        flops=2 * M * c4 * e2 + 8 * M * c4,
        transcendentals=M,
        bytes_accessed=M * c4 * in_item + M * e2 * out_item
        + sum(int(w.size) * w.dtype.itemsize for w in weights)
        + int(bias.size) * 4,
    )

    def _call(single_buffer_params, flat_out):
        pmode = ({"pipeline_mode": pl.Buffered(1)}
                 if single_buffer_params else {})
        w_specs = [pl.BlockSpec(w.shape, lambda i: (0, 0), **pmode)
                   for w in weights]
        b_spec = pl.BlockSpec((1, e2), lambda i: (0, 0), **pmode)
        in_specs = ([pl.BlockSpec((block_rows, 2, Wp, c2),
                                  lambda i: (i, 0, 0, 0))]
                    + w_specs + [b_spec])
        if flat_out:
            out_shape = jax.ShapeDtypeStruct((M1, Wp * e2), x.dtype)
            out_spec = pl.BlockSpec((block_rows, Wp * e2), lambda i: (i, 0))
        else:
            out_shape = jax.ShapeDtypeStruct((M1, Wp, e2), x.dtype)
            out_spec = pl.BlockSpec((block_rows, Wp, e2), lambda i: (i, 0, 0))

        kern = functools.partial(_patch_merging_kernel, eps=eps,
                                 dot_dtype=mxu_dtype, fuse_k=fuse_k,
                                 flat_out=flat_out)
        fn = pl.pallas_call(
            kern,
            out_shape=out_shape,
            grid=grid,
            in_specs=in_specs,
            out_specs=out_spec,
            compiler_params=pltpu.CompilerParams(
                dimension_semantics=("parallel",),
                vmem_limit_bytes=vmem_limit),
            cost_estimate=cost,
        )
        return fn(xr, *weights, bias)

    # Preference order; fall back if a feature (Buffered(1) specs or the
    # lane-dense flattened store) is rejected by the running JAX/Mosaic.
    attempts = [(True, want_flat), (False, want_flat)]
    if want_flat:
        attempts.append((False, False))

    out, err = None, None
    for single_buf, flat in attempts:
        try:
            out = _call(single_buf, flat)
            break
        except Exception as e:        # pragma: no cover - fallback path
            err = e
            out = None
    if out is None:
        raise err

    return out.reshape(B, Hp, Wp, e2)


if __name__ == "__main__":
    # Small shapes consistent with the module: dim=32, spatial 16x16, batch 2.
    B, H, W, dim = 2, 16, 16, 32

    key = jax.random.PRNGKey(0)
    kx, kg, kb, kw = jax.random.split(key, 4)
    x = jax.random.normal(kx, (B, H, W, dim), dtype=jnp.float32)
    gamma = 1.0 + 0.1 * jax.random.normal(kg, (4 * dim,), dtype=jnp.float32)
    beta = 0.1 * jax.random.normal(kb, (4 * dim,), dtype=jnp.float32)
    w_red = 0.02 * jax.random.normal(kw, (2 * dim, 4 * dim), dtype=jnp.float32)

    # Pure-JAX reference matching the PyTorch module exactly (f32 math).
    x0 = x[:, 0::2, 0::2, :]
    x1 = x[:, 1::2, 0::2, :]
    x2 = x[:, 0::2, 1::2, :]
    x3 = x[:, 1::2, 1::2, :]
    z = jnp.concatenate([x0, x1, x2, x3], axis=-1)           # (B, H/2, W/2, 4C)
    mu = jnp.mean(z, axis=-1, keepdims=True)
    var = jnp.mean((z - mu) ** 2, axis=-1, keepdims=True)
    ref = ((z - mu) * jax.lax.rsqrt(var + 1e-5) * gamma + beta) @ w_red.T

    # 1) exact-math path (f32 MXU operands) -> tight tolerance.
    out_f32 = patch_merging_2d(x, gamma, beta, w_red, mxu_dtype=jnp.float32)
    out_f32 = jax.block_until_ready(out_f32)
    assert out_f32.shape == (B, H // 2, W // 2, 2 * dim)
    assert jnp.allclose(out_f32, ref, atol=1e-4, rtol=1e-4)

    # 2) default fast path (bf16 MXU operands, f32 accumulation) -> looser tol.
    out = patch_merging_2d(x, gamma, beta, w_red)
    out = jax.block_until_ready(out)
    assert out.shape == (B, H // 2, W // 2, 2 * dim)
    assert jnp.allclose(out, ref, atol=1e-2, rtol=1e-2)

    print("KERNEL_OK")
</pallas_src>

<mosaic_0001>
module attributes {stable_mosaic.version = 11 : i64} {
  func.func @_patch_merging_kernel(%arg0: i32, %arg1: memref<8x2x8x64xf32, #tpu.memory_space<vmem>>, %arg2: memref<128x64xf32, #tpu.memory_space<vmem>>, %arg3: memref<1x64xf32, #tpu.memory_space<vmem>>, %arg4: memref<8x512xf32, #tpu.memory_space<vmem>>) attributes {dimension_semantics = [#tpu.dimension_semantics<parallel>], iteration_bounds = array<i64: 2>, scalar_prefetch = 0 : i64, scratch_operands = 0 : i64, tpu.core_type = #tpu.core_type<tc>, window_params = [{transform_indices = @transform_0, window_bounds = array<i64: 8, 2, 8, 64>}, {pipeline_mode = #tpu.pipeline_mode<synchronous>, transform_indices = @transform_1, window_bounds = array<i64: 128, 64>}, {pipeline_mode = #tpu.pipeline_mode<synchronous>, transform_indices = @transform_2, window_bounds = array<i64: 1, 64>}, {transform_indices = @transform_3, window_bounds = array<i64: 8, 512>}]} {
    %c0 = arith.constant 0 : index
    %c0_0 = arith.constant 0 : index
    %c0_1 = arith.constant 0 : index
    %c0_2 = arith.constant 0 : index
    %0 = vector.load %arg1[%c0, %c0_0, %c0_1, %c0_2] : memref<8x2x8x64xf32, #tpu.memory_space<vmem>>, vector<8x1x8x64xf32>
    %1 = vector.shape_cast %0 : vector<8x1x8x64xf32> to vector<8x8x64xf32>
    %2 = vector.shape_cast %1 : vector<8x8x64xf32> to vector<64x64xf32>
    %c0_3 = arith.constant 0 : index
    %c1 = arith.constant 1 : index
    %c0_4 = arith.constant 0 : index
    %c0_5 = arith.constant 0 : index
    %3 = vector.load %arg1[%c0_3, %c1, %c0_4, %c0_5] : memref<8x2x8x64xf32, #tpu.memory_space<vmem>>, vector<8x1x8x64xf32>
    %4 = vector.shape_cast %3 : vector<8x1x8x64xf32> to vector<8x8x64xf32>
    %5 = vector.shape_cast %4 : vector<8x8x64xf32> to vector<64x64xf32>
    %6 = tpu.concatenate %2, %5 in 1 : vector<64x64xf32>, vector<64x64xf32> -> vector<64x128xf32>
    %cst = arith.constant dense<0.000000e+00> : vector<64xf32>
    %7 = vector.multi_reduction <add>, %6, %cst [1] : vector<64x128xf32> to vector<64xf32>
    %8 = vector.shape_cast %7 : vector<64xf32> to vector<64x1xf32>
    %cst_6 = arith.constant 1.280000e+02 : f32
    %9 = vector.broadcast %cst_6 : f32 to vector<64x1xf32>
    %10 = arith.divf %8, %9 : vector<64x1xf32>
    %11 = vector.broadcast %10 : vector<64x1xf32> to vector<64x128xf32>
    %12 = arith.subf %6, %11 : vector<64x128xf32>
    %13 = arith.mulf %12, %12 : vector<64x128xf32>
    %cst_7 = arith.constant dense<0.000000e+00> : vector<64xf32>
    %14 = vector.multi_reduction <add>, %13, %cst_7 [1] : vector<64x128xf32> to vector<64xf32>
    %15 = vector.shape_cast %14 : vector<64xf32> to vector<64x1xf32>
    %cst_8 = arith.constant 1.280000e+02 : f32
    %16 = vector.broadcast %cst_8 : f32 to vector<64x1xf32>
    %17 = arith.divf %15, %16 : vector<64x1xf32>
    %cst_9 = arith.constant 9.99999974E-6 : f32
    %18 = vector.broadcast %cst_9 : f32 to vector<64x1xf32>
    %19 = arith.addf %17, %18 : vector<64x1xf32>
    %20 = math.rsqrt %19 : vector<64x1xf32>
    %21 = vector.broadcast %20 : vector<64x1xf32> to vector<64x128xf32>
    %22 = arith.mulf %12, %21 : vector<64x128xf32>
    %c0_10 = arith.constant 0 : index
    %c0_11 = arith.constant 0 : index
    %23 = vector.load %arg2[%c0_10, %c0_11] : memref<128x64xf32, #tpu.memory_space<vmem>>, vector<128x64xf32>
    %cst_12 = arith.constant dense<0.000000e+00> : vector<64x64xf32>
    %24 = tpu.matmul %22, %23, %cst_12 {dimension_numbers = #tpu.dot_dimension_numbers<[1], [0], [0], [1], [0, 0, 1, 1], [], []>} : vector<64x128xf32>, vector<128x64xf32>, vector<64x64xf32> -> vector<64x64xf32>
    %c0_13 = arith.constant 0 : index
    %c0_14 = arith.constant 0 : index
    %25 = vector.load %arg3[%c0_13, %c0_14] : memref<1x64xf32, #tpu.memory_space<vmem>>, vector<1x64xf32>
    %26 = vector.broadcast %25 : vector<1x64xf32> to vector<64x64xf32>
    %27 = arith.addf %24, %26 : vector<64x64xf32>
    %28 = vector.shape_cast %27 : vector<64x64xf32> to vector<8x512xf32>
    %c0_15 = arith.constant 0 : index
    %c0_16 = arith.constant 0 : index
    %29 = vector.load %arg4[%c0_15, %c0_16] : memref<8x512xf32, #tpu.memory_space<vmem>>, vector<8x512xf32>
    tpu.vector_store %arg4[%c0_15, %c0_16], %28 {strides = array<i32>} : memref<8x512xf32, #tpu.memory_space<vmem>>, vector<8x512xf32>,
    return
  }
  func.func @transform_0(%arg0: i32) -> (i32, i32, i32, i32) {
    %c0_i32 = arith.constant 0 : i32
    %c0_i32_0 = arith.constant 0 : i32
    %c0_i32_1 = arith.constant 0 : i32
    %c0_i32_2 = arith.constant 0 : i32
    return %arg0, %c0_i32, %c0_i32_0, %c0_i32_1 : i32, i32, i32, i32
  }
  func.func @transform_1(%arg0: i32) -> (i32, i32) {
    %c0_i32 = arith.constant 0 : i32
    %c0_i32_0 = arith.constant 0 : i32
    %c0_i32_1 = arith.constant 0 : i32
    return %c0_i32, %c0_i32_0 : i32, i32
  }
  func.func @transform_2(%arg0: i32) -> (i32, i32) {
    %c0_i32 = arith.constant 0 : i32
    %c0_i32_0 = arith.constant 0 : i32
    %c0_i32_1 = arith.constant 0 : i32
    return %c0_i32, %c0_i32_0 : i32, i32
  }
  func.func @transform_3(%arg0: i32) -> (i32, i32) {
    %c0_i32 = arith.constant 0 : i32
    %c0_i32_0 = arith.constant 0 : i32
    return %arg0, %c0_i32 : i32, i32
  }
}

module attributes {stable_mosaic.version = 11 : i64} {
  func.func @_patch_merging_kernel(%arg0: i32, %arg1: memref<8x2x8x64xf32, #tpu.memory_space<vmem>>, %arg2: memref<128x64xf32, #tpu.memory_space<vmem>>, %arg3: memref<1x64xf32, #tpu.memory_space<vmem>>, %arg4: memref<8x512xf32, #tpu.memory_space<vmem>>) attributes {dimension_semantics = [#tpu.dimension_semantics<parallel>], iteration_bounds = array<i64: 2>, scalar_prefetch = 0 : i64, scratch_operands = 0 : i64, tpu.core_type = #tpu.core_type<tc>, window_params = [{transform_indices = @transform_0, window_bounds = array<i64: 8, 2, 8, 64>}, {pipeline_mode = #tpu.pipeline_mode<synchronous>, transform_indices = @transform_1, window_bounds = array<i64: 128, 64>}, {pipeline_mode = #tpu.pipeline_mode<synchronous>, transform_indices = @transform_2, window_bounds = array<i64: 1, 64>}, {transform_indices = @transform_3, window_bounds = array<i64: 8, 512>}]} {
    %c0 = arith.constant 0 : index
    %c0_0 = arith.constant 0 : index
    %c0_1 = arith.constant 0 : index
    %c0_2 = arith.constant 0 : index
    %0 = vector.load %arg1[%c0, %c0_0, %c0_1, %c0_2] : memref<8x2x8x64xf32, #tpu.memory_space<vmem>>, vector<8x1x8x64xf32>
    %1 = vector.shape_cast %0 : vector<8x1x8x64xf32> to vector<8x8x64xf32>
    %2 = vector.shape_cast %1 : vector<8x8x64xf32> to vector<64x64xf32>
    %c0_3 = arith.constant 0 : index
    %c1 = arith.constant 1 : index
    %c0_4 = arith.constant 0 : index
    %c0_5 = arith.constant 0 : index
    %3 = vector.load %arg1[%c0_3, %c1, %c0_4, %c0_5] : memref<8x2x8x64xf32, #tpu.memory_space<vmem>>, vector<8x1x8x64xf32>
    %4 = vector.shape_cast %3 : vector<8x1x8x64xf32> to vector<8x8x64xf32>
    %5 = vector.shape_cast %4 : vector<8x8x64xf32> to vector<64x64xf32>
    %6 = tpu.concatenate %2, %5 in 1 : vector<64x64xf32>, vector<64x64xf32> -> vector<64x128xf32>
    %cst = arith.constant dense<0.000000e+00> : vector<64xf32>
    %7 = vector.multi_reduction <add>, %6, %cst [1] : vector<64x128xf32> to vector<64xf32>
    %8 = vector.shape_cast %7 : vector<64xf32> to vector<64x1xf32>
    %cst_6 = arith.constant 1.280000e+02 : f32
    %9 = vector.broadcast %cst_6 : f32 to vector<64x1xf32>
    %10 = arith.divf %8, %9 : vector<64x1xf32>
    %11 = vector.broadcast %10 : vector<64x1xf32> to vector<64x128xf32>
    %12 = arith.subf %6, %11 : vector<64x128xf32>
    %13 = arith.mulf %12, %12 : vector<64x128xf32>
    %cst_7 = arith.constant dense<0.000000e+00> : vector<64xf32>
    %14 = vector.multi_reduction <add>, %13, %cst_7 [1] : vector<64x128xf32> to vector<64xf32>
    %15 = vector.shape_cast %14 : vector<64xf32> to vector<64x1xf32>
    %cst_8 = arith.constant 1.280000e+02 : f32
    %16 = vector.broadcast %cst_8 : f32 to vector<64x1xf32>
    %17 = arith.divf %15, %16 : vector<64x1xf32>
    %cst_9 = arith.constant 9.99999974E-6 : f32
    %18 = vector.broadcast %cst_9 : f32 to vector<64x1xf32>
    %19 = arith.addf %17, %18 : vector<64x1xf32>
    %20 = math.rsqrt %19 : vector<64x1xf32>
    %21 = vector.broadcast %20 : vector<64x1xf32> to vector<64x128xf32>
    %22 = arith.mulf %12, %21 : vector<64x128xf32>
    %c0_10 = arith.constant 0 : index
    %c0_11 = arith.constant 0 : index
    %23 = vector.load %arg2[%c0_10, %c0_11] : memref<128x64xf32, #tpu.memory_space<vmem>>, vector<128x64xf32>
    %cst_12 = arith.constant dense<0.000000e+00> : vector<64x64xf32>
    %24 = tpu.matmul %22, %23, %cst_12 {dimension_numbers = #tpu.dot_dimension_numbers<[1], [0], [0], [1], [0, 0, 1, 1], [], []>} : vector<64x128xf32>, vector<128x64xf32>, vector<64x64xf32> -> vector<64x64xf32>
    %c0_13 = arith.constant 0 : index
    %c0_14 = arith.constant 0 : index
    %25 = vector.load %arg3[%c0_13, %c0_14] : memref<1x64xf32, #tpu.memory_space<vmem>>, vector<1x64xf32>
    %26 = vector.broadcast %25 : vector<1x64xf32> to vector<64x64xf32>
    %27 = arith.addf %24, %26 : vector<64x64xf32>
    %28 = vector.shape_cast %27 : vector<64x64xf32> to vector<8x512xf32>
    %c0_15 = arith.constant 0 : index
    %c0_16 = arith.constant 0 : index
    %29 = vector.load %arg4[%c0_15, %c0_16] : memref<8x512xf32, #tpu.memory_space<vmem>>, vector<8x512xf32>
    tpu.vector_store %arg4[%c0_15, %c0_16], %28 {strides = array<i32>} : memref<8x512xf32, #tpu.memory_space<vmem>>, vector<8x512xf32>,
    return
  }
  func.func @transform_0(%arg0: i32) -> (i32, i32, i32, i32) {
    %c0_i32 = arith.constant 0 : i32
    %c0_i32_0 = arith.constant 0 : i32
    %c0_i32_1 = arith.constant 0 : i32
    %c0_i32_2 = arith.constant 0 : i32
    return %arg0, %c0_i32, %c0_i32_0, %c0_i32_1 : i32, i32, i32, i32
  }
  func.func @transform_1(%arg0: i32) -> (i32, i32) {
    %c0_i32 = arith.constant 0 : i32
    %c0_i32_0 = arith.constant 0 : i32
    %c0_i32_1 = arith.constant 0 : i32
    return %c0_i32, %c0_i32_0 : i32, i32
  }
  func.func @transform_2(%arg0: i32) -> (i32, i32) {
    %c0_i32 = arith.constant 0 : i32
    %c0_i32_0 = arith.constant 0 : i32
    %c0_i32_1 = arith.constant 0 : i32
    return %c0_i32, %c0_i32_0 : i32, i32
  }
  func.func @transform_3(%arg0: i32) -> (i32, i32) {
    %c0_i32 = arith.constant 0 : i32
    %c0_i32_0 = arith.constant 0 : i32
    return %arg0, %c0_i32 : i32, i32
  }
}

module attributes {stable_mosaic.version = 11 : i64} {
  func.func @_patch_merging_kernel(%arg0: i32, %arg1: memref<8x2x8x64xf32, #tpu.memory_space<vmem>>, %arg2: memref<128x64xf32, #tpu.memory_space<vmem>>, %arg3: memref<1x64xf32, #tpu.memory_space<vmem>>, %arg4: memref<8x8x64xf32, #tpu.memory_space<vmem>>) attributes {dimension_semantics = [#tpu.dimension_semantics<parallel>], iteration_bounds = array<i64: 2>, scalar_prefetch = 0 : i64, scratch_operands = 0 : i64, tpu.core_type = #tpu.core_type<tc>, window_params = [{transform_indices = @transform_0, window_bounds = array<i64: 8, 2, 8, 64>}, {pipeline_mode = #tpu.pipeline_mode<synchronous>, transform_indices = @transform_1, window_bounds = array<i64: 128, 64>}, {pipeline_mode = #tpu.pipeline_mode<synchronous>, transform_indices = @transform_2, window_bounds = array<i64: 1, 64>}, {transform_indices = @transform_3, window_bounds = array<i64: 8, 8, 64>}]} {
    %c0 = arith.constant 0 : index
    %c0_0 = arith.constant 0 : index
    %c0_1 = arith.constant 0 : index
    %c0_2 = arith.constant 0 : index
    %0 = vector.load %arg1[%c0, %c0_0, %c0_1, %c0_2] : memref<8x2x8x64xf32, #tpu.memory_space<vmem>>, vector<8x1x8x64xf32>
    %1 = vector.shape_cast %0 : vector<8x1x8x64xf32> to vector<8x8x64xf32>
    %2 = vector.shape_cast %1 : vector<8x8x64xf32> to vector<64x64xf32>
    %c0_3 = arith.constant 0 : index
    %c1 = arith.constant 1 : index
    %c0_4 = arith.constant 0 : index
    %c0_5 = arith.constant 0 : index
    %3 = vector.load %arg1[%c0_3, %c1, %c0_4, %c0_5] : memref<8x2x8x64xf32, #tpu.memory_space<vmem>>, vector<8x1x8x64xf32>
    %4 = vector.shape_cast %3 : vector<8x1x8x64xf32> to vector<8x8x64xf32>
    %5 = vector.shape_cast %4 : vector<8x8x64xf32> to vector<64x64xf32>
    %6 = tpu.concatenate %2, %5 in 1 : vector<64x64xf32>, vector<64x64xf32> -> vector<64x128xf32>
    %cst = arith.constant dense<0.000000e+00> : vector<64xf32>
    %7 = vector.multi_reduction <add>, %6, %cst [1] : vector<64x128xf32> to vector<64xf32>
    %8 = vector.shape_cast %7 : vector<64xf32> to vector<64x1xf32>
    %cst_6 = arith.constant 1.280000e+02 : f32
    %9 = vector.broadcast %cst_6 : f32 to vector<64x1xf32>
    %10 = arith.divf %8, %9 : vector<64x1xf32>
    %11 = vector.broadcast %10 : vector<64x1xf32> to vector<64x128xf32>
    %12 = arith.subf %6, %11 : vector<64x128xf32>
    %13 = arith.mulf %12, %12 : vector<64x128xf32>
    %cst_7 = arith.constant dense<0.000000e+00> : vector<64xf32>
    %14 = vector.multi_reduction <add>, %13, %cst_7 [1] : vector<64x128xf32> to vector<64xf32>
    %15 = vector.shape_cast %14 : vector<64xf32> to vector<64x1xf32>
    %cst_8 = arith.constant 1.280000e+02 : f32
    %16 = vector.broadcast %cst_8 : f32 to vector<64x1xf32>
    %17 = arith.divf %15, %16 : vector<64x1xf32>
    %cst_9 = arith.constant 9.99999974E-6 : f32
    %18 = vector.broadcast %cst_9 : f32 to vector<64x1xf32>
    %19 = arith.addf %17, %18 : vector<64x1xf32>
    %20 = math.rsqrt %19 : vector<64x1xf32>
    %21 = vector.broadcast %20 : vector<64x1xf32> to vector<64x128xf32>
    %22 = arith.mulf %12, %21 : vector<64x128xf32>
    %c0_10 = arith.constant 0 : index
    %c0_11 = arith.constant 0 : index
    %23 = vector.load %arg2[%c0_10, %c0_11] : memref<128x64xf32, #tpu.memory_space<vmem>>, vector<128x64xf32>
    %cst_12 = arith.constant dense<0.000000e+00> : vector<64x64xf32>
    %24 = tpu.matmul %22, %23, %cst_12 {dimension_numbers = #tpu.dot_dimension_numbers<[1], [0], [0], [1], [0, 0, 1, 1], [], []>} : vector<64x128xf32>, vector<128x64xf32>, vector<64x64xf32> -> vector<64x64xf32>
    %c0_13 = arith.constant 0 : index
    %c0_14 = arith.constant 0 : index
    %25 = vector.load %arg3[%c0_13, %c0_14] : memref<1x64xf32, #tpu.memory_space<vmem>>, vector<1x64xf32>
    %26 = vector.broadcast %25 : vector<1x64xf32> to vector<64x64xf32>
    %27 = arith.addf %24, %26 : vector<64x64xf32>
    %28 = vector.shape_cast %27 : vector<64x64xf32> to vector<8x8x64xf32>
    %c0_15 = arith.constant 0 : index
    %c0_16 = arith.constant 0 : index
    %c0_17 = arith.constant 0 : index
    %29 = vector.load %arg4[%c0_15, %c0_16, %c0_17] : memref<8x8x64xf32, #tpu.memory_space<vmem>>, vector<8x8x64xf32>
    tpu.vector_store %arg4[%c0_15, %c0_16, %c0_17], %28 {strides = array<i32>} : memref<8x8x64xf32, #tpu.memory_space<vmem>>, vector<8x8x64xf32>,
    return
  }
  func.func @transform_0(%arg0: i32) -> (i32, i32, i32, i32) {
    %c0_i32 = arith.constant 0 : i32
    %c0_i32_0 = arith.constant 0 : i32
    %c0_i32_1 = arith.constant 0 : i32
    %c0_i32_2 = arith.constant 0 : i32
    return %arg0, %c0_i32, %c0_i32_0, %c0_i32_1 : i32, i32, i32, i32
  }
  func.func @transform_1(%arg0: i32) -> (i32, i32) {
    %c0_i32 = arith.constant 0 : i32
    %c0_i32_0 = arith.constant 0 : i32
    %c0_i32_1 = arith.constant 0 : i32
    return %c0_i32, %c0_i32_0 : i32, i32
  }
  func.func @transform_2(%arg0: i32) -> (i32, i32) {
    %c0_i32 = arith.constant 0 : i32
    %c0_i32_0 = arith.constant 0 : i32
    %c0_i32_1 = arith.constant 0 : i32
    return %c0_i32, %c0_i32_0 : i32, i32
  }
  func.func @transform_3(%arg0: i32) -> (i32, i32, i32) {
    %c0_i32 = arith.constant 0 : i32
    %c0_i32_0 = arith.constant 0 : i32
    %c0_i32_1 = arith.constant 0 : i32
    return %arg0, %c0_i32, %c0_i32_0 : i32, i32, i32
  }
}

</mosaic_0001>

<bundles_post_ra>
// kernel: tpu_custom_call.1
= control target key start
LH: loop header
LB: loop body
LE: loop exit
PB: predicated region body
PF: predicated region fallthrough
CT: control target
= control target key end

     0   :  { %8 = vsyncpa [#allocation3], 0  ;;  %s1185_s0 = inlined_call_operand.hbm [shape: f32[16,2,8,64], index: 0, kind: input, shape index: {}]   ;;  %s1186_s1 = inlined_call_operand.vmem [shape: f32[128,64], index: 1, kind: input, shape index: {}]   ;;  %s1187_s2 = inlined_call_operand.vmem [shape: f32[1,64], index: 2, kind: input, shape index: {}]   ;;  %s1188_s3 = inlined_call_operand.hbm [shape: f32[16,8,64], index: 3, kind: output, shape index: {}]  }
   0x1   :  { %10 = vsyncpa [#allocation3 + $0x1], 0 }
   0x2   :  { %11 = vsyncpa [#allocation4], 0 }
   0x3   :  { %13 = vsyncpa [#allocation4 + $0x1], 0  ;;  %s897_s12 = smov 0   ;;  %s899_s13 = smov 0  }
   0x4   :  { %s901_s14 = smov 0   ;;  %s903_s15 = smov 0  }
   0x5 LB: > { %s918_s16 = sadd.s32 4294967295, %s868_s15   ;;  %s562_s17 = sadd.s32 4294967294, %s868_s15   ;;  %s868_s15 = sphi %s903_s15, %s1201_s15   ;;  %s864_s14 = sphi %s901_s14, %s1200_s14   ;;  %s860_s13 = sphi %s899_s13, %s1199_s13   ;;  %s856_s12 = sphi %s897_s12, %s1198_s12  }
   0x6   : > { %s922_s18 = sadd.s32 1, %s868_s15   ;;  %s26_s19 = sadd.s32 1, %s864_s14 }
   0x7   : > { %s23_s20 = ssub.s32 %s868_s15, %s922_s18  ;;  %p33_p0 = scmp.ne.s32.totalorder %s864_s14, %s860_s13 }
   0x8   : > { %p24_p1 = scmp.eq.s32.totalorder %s23_s20, 0  ;;  %p34_p2 = scmp.eq.s32.totalorder %s868_s15, 0 }
   0x9   : > { %p39_p3 = scmp.ne.s32.totalorder %s860_s13, %s856_s12  ;;  %p40_p4 = scmp.eq.s32.totalorder %s918_s16, 0 }
   0xa   : > { %s934_s21 = scalar_select %p24_p1, %s864_s14, %s26_s19  }
   0xb   : > { %p936_p5 = por %p34_p2, %p33_p0  ;;  %p940_p6 = por %p40_p4, %p39_p3 }
   0xc   : > { %p105_p7 = scmp.eq.s32.totalorder %s918_s16, 1  ;;  %p111_p8 = scmp.eq.s32.totalorder %s562_s17, 1 }
   0xd   : > { %p717_p10 = scmp.lt.s32.totalorder %s868_s15, 2  ;;  %s137_s26 = sand.u32 1, %s864_s14  }
   0xe   : > { %p947_p11 = por %p105_p7, %p33_p0  ;;  %p951_p12 = por %p111_p8, %p39_p3 }
   0xf   : > { %s587_s27 = sshll.u32 %s868_s15, 11  ;;  %s565_s28 = sshll.u32 %s137_s26, 7 }
  0x10   : > { %s1192_s24 = scalar_select %p947_p11, 1, 0 }
  0x11   : > { %s1193_s25 = scalar_select %p951_p12, 1, 0 }
  0x12   : > { %s960_s4 = scalar_lea.hbm %s1185_s0, %s587_s27  ;;  %s141_s5 = scalar_lea.vmem [#allocation2], %s565_s28 }
  0x13   : > { %s149_s6 = sshll.u32 %s141_s5, 4  ;;  %p964_p13 = pnand %p717_p10, %p936_p5  ;;  %s968_s6 = int_to_ptr.vmem [resolvable:$true] %s149_s6 }
  0x14   : > { %s970_s8 = scalar_lea.sflag [#allocation3], %s137_s26  ;;  %s772_s9 = scalar_lea.hbm %s960_s4, 2048 }
  0x15   : > { %p773_p0 = scmp.ne.s32.totalorder %s960_s4, %s772_s9  ;;  %p774_p1 = pneg %p964_p13 }
  0x16   : > { %s777_s17 = scalar_lea.hbm %s1185_s0, 4096  ;;  %p778_p4 = scmp.lt.u32.totalorder %s960_s4, %s1185_s0 }
  0x17   : > { %p775_p2 = pnand %p774_p1, %p773_p0  ;;  %p779_p5 = scmp.lt.u32.totalorder %s777_s17, %s772_s9 }
  0x18   : > { %p781_p8 = scmp.lt.u32.totalorder %s772_s9, %s960_s4 }
  0x19   : > { %p776_p3 = pneg %p775_p2  ;;  %p780_p7 = por %p779_p5, %p778_p4 }
  0x1b   : > { %p782_p10 = por %p781_p8, %p780_p7 }
  0x1d   : > { %p783_p9 = pnand %p782_p10, %p776_p3 }
  0x1f   : > { %786 = shalt.err (!%p783_p9)
}
  0x20   : > { %s787_s22 = scalar_lea.vmem %s968_s6, 2048  ;;  %s870_s26 = smov [#allocation2]  }
  0x21   : > { %p788_p0 = scmp.ne.s32.totalorder %s968_s6, %s787_s22  ;;  %s792_s27 = sshll.u32 %s870_s26, 4  ;;  %s793_s27 = int_to_ptr.vmem [resolvable:$false] %s792_s27 }
  0x22   : > { %s794_s28 = scalar_lea.vmem %s793_s27, 4096  ;;  %p795_p11 = scmp.lt.s32.totalorder %s968_s6, %s793_s27 }
  0x23   : > { %p790_p2 = pnand %p788_p0, %p774_p1  ;;  %p796_p4 = scmp.lt.s32.totalorder %s794_s28, %s787_s22 }
  0x25   : > { %p791_p12 = pneg %p790_p2  ;;  %p797_p5 = por %p796_p4, %p795_p11 }
  0x27   : > { %p798_p7 = pnand %p797_p5, %p791_p12 }
  0x29   : > { %801 = shalt.err (!%p798_p7)
}
  0x2a   : > { %s871_s29 = smov 128   ;;  %s872_s30 = smov 8  }
  0x2b   : > { %712 = dma.hbm_to_vmem [thread:$0]  (!%p964_p13), %s960_s4, 2048, %s968_s6, %s970_s8, %s871_s29, %s871_s29, %s872_s30  }
  0x2c   : > { %p569_p9 = scmp.ge.s32.totalorder %s868_s15, 1  ;;  %p157_p1 = scmp.lt.s32.totalorder %s868_s15, 3 }
  0x2e   : > { %p158_p3 = pnand %p569_p9, %p157_p1 }
  0x2f   : > { %s1001_s5 = sand.u32 (!%p158_p3), 1, %s860_s13  }
  0x30   : > { %161 = sbr.rel (%p158_p3) target bundleno = 726 (0x2d6), region = 32  ;;  %s570_s9 = sshll.u32 (!%p158_p3), %s1001_s5, 7 }
  0x31   : > { %s164_s10 = scalar_lea.sflag (!%p158_p3), [#allocation3], %s1001_s5  ;;  %s1005_s11 = scalar_lea.vmem (!%p158_p3), [#allocation2], %s570_s9 }
  0x37   : > { %847 = dma.done.wait (%p940_p6), %s164_s10, 2048  }
  0x38   : > { %849 = vsyncadd (%p940_p6), %s164_s10, 4294965248  ;;  %v572_v0 = vld [vmem:[%s1005_s11 + $0x8] sm:$0xff]  ;;  %v573_v1 = vld [vmem:[%s1005_s11 + $0x18] sm:$0xff]  ;;  %s873_s4 = smov 64   ;;  %vm241_vm0 = vcmask 523264   ;;  %s588_s7 = sshll.u32 %s918_s16, 10 }
  0x39   : > { %217 = vrot.lane.b32.xlu0 %v572_v0, %s873_s4  ;;  %219 = vrot.lane.b32.xlu1 %v573_v1, %s873_s4  ;;  %v576_v2 = vld [vmem:[%s1005_s11 + $0x48] sm:$0xff]  ;;  %v577_v3 = vld [vmem:[%s1005_s11 + $0x58] sm:$0xff]  ;;  %s1137_s20 = scalar_lea.hbm %s1188_s3, %s588_s7  ;;  %s476_s16 = scalar_lea.sflag [#allocation4], %s1001_s5 }
  0x3a   : > { %v574_v4 = vld [vmem:[%s1005_s11 + $0x28] sm:$0xff]  ;;  %v575_v6 = vld [vmem:[%s1005_s11 + $0x38] sm:$0xff]  ;;  %v192_v8 = vld [vmem:[%s1005_s11] sm:$0xff]  ;;  %p1195_p11 = scmp.ne.s32.totalorder %s1192_s24, 0  ;;  %s874_s26 = smov [#allocation5]  }
  0x3b   : > { %v578_v5 = vld [vmem:[%s1005_s11 + $0x68] sm:$0xff]  ;;  %v579_v7 = vld [vmem:[%s1005_s11 + $0x78] sm:$0xff]  ;;  %v193_v11 = vld [vmem:[%s1005_s11 + $0x10] sm:$0xff]  ;;  %s806_s27 = sshll.u32 %s874_s26, 4  ;;  %s807_s27 = int_to_ptr.vmem [resolvable:$false] %s806_s27 }
  0x3c   : > { %v196_v13 = vld [vmem:[%s1005_s11 + $0x40] sm:$0xff]  ;;  %v197_v17 = vld [vmem:[%s1005_s11 + $0x50] sm:$0xff]  ;;  %v340_v33 = vld [vmem:[%s1186_s1 + $0x8] sm:$0xff]  ;;  %s808_s28 = scalar_lea.vmem %s807_s27, 2048 }
  0x3d   : > { %225 = vrot.lane.b32.xlu0 %v576_v2, %s873_s4  ;;  %227 = vrot.lane.b32.xlu1 %v577_v3, %s873_s4  ;;  %v194_v19 = vld [vmem:[%s1005_s11 + $0x20] sm:$0xff]  ;;  %v195_v25 = vld [vmem:[%s1005_s11 + $0x30] sm:$0xff] }
  0x3e   : > { %v198_v23 = vld [vmem:[%s1005_s11 + $0x60] sm:$0xff]  ;;  %v199_v29 = vld [vmem:[%s1005_s11 + $0x70] sm:$0xff]  ;;  %v342_v36 = vld [vmem:[%s1186_s1 + $0x18] sm:$0xff]  ;;  %s571_s11 = sshll.u32 %s1001_s5, 6 }
  0x3f   : > { %v339_v32 = vld [vmem:[%s1186_s1] sm:$0xff]  ;;  %v341_v34 = vld [vmem:[%s1186_s1 + $0x10] sm:$0xff]  ;;  %v344_v39 = vld [vmem:[%s1186_s1 + $0x28] sm:$0xff]  ;;  %s189_s6 = scalar_lea.vmem [#allocation5], %s571_s11 }
  0x40   : > { %v657_v35 = vpack.c.bf16 %v340_v33, %v339_v32  ;;  %v661_v37 = vpack.c.bf16 %v342_v36, %v341_v34  ;;  %v343_v38 = vld [vmem:[%s1186_s1 + $0x20] sm:$0xff]  ;;  %s489_s8 = sshll.u32 %s189_s6, 4  ;;  %s1139_s8 = int_to_ptr.vmem [resolvable:$true] %s489_s8 }
  0x41   : > { %221 = vrot.lane.b32.xlu0 %v574_v4, %s873_s4  ;;  %229 = vrot.lane.b32.xlu1 %v578_v5, %s873_s4  ;;  %v665_v40 = vpack.c.bf16 %v344_v39, %v343_v38  ;;  %s802_s22 = scalar_lea.vmem %s1139_s8, 1024  ;;  %p809_p8 = scmp.lt.s32.totalorder %s1139_s8, %s807_s27 }
  0x42   : > { %658 = vmatprep.subr.bf16.mxu0 %v657_v35  ;;  %689 = vmatprep.subr.bf16.mxu1 %v657_v35  ;;  %p803_p6 = scmp.ne.s32.totalorder %s1139_s8, %s802_s22  ;;  %p810_p10 = scmp.lt.s32.totalorder %s808_s28, %s802_s22 }
  0x43   : > { %660 = vmatpush3.bf16.msra.mxu0 %v657_v35  ;;  %697 = vmatpush3.bf16.msra.mxu1 %v657_v35 }
  0x44   : > { %662 = vmatprep.subr.bf16.mxu0 %v661_v37  ;;  %690 = vmatprep.subr.bf16.mxu1 %v661_v37  ;;  %p804_p12 = pnand %p803_p6, %p1195_p11  ;;  %p811_p0 = por %p810_p10, %p809_p8 }
  0x45   : > { %223 = vrot.lane.b32.xlu0 %v575_v6, %s873_s4  ;;  %231 = vrot.lane.b32.xlu1 %v579_v7, %s873_s4 }
  0x46   : > { %p805_p13 = pneg %p804_p12 }
  0x47   : > { %664 = vmatpush3.bf16.msra.mxu0 %v661_v37  ;;  %698 = vmatpush3.bf16.msra.mxu1 %v661_v37 }
  0x48   : > { %666 = vmatprep.subr.bf16.mxu0 %v665_v40  ;;  %691 = vmatprep.subr.bf16.mxu1 %v665_v40  ;;  %p812_p2 = pnand %p811_p0, %p805_p13 }
  0x4b   : > { %668 = vmatpush3.bf16.msra.mxu0 %v665_v40  ;;  %699 = vmatpush3.bf16.msra.mxu1 %v665_v40 }
  0xab   : > { %v218_v9 = vpop.permute.xlu0 %217  ;;  %v220_v10 = vpop.permute.xlu1 %219 }
  0xac   : > { %v242_v12 = vsel %vm241_vm0, %v192_v8, %v218_v9  ;;  %v243_v14 = vsel %vm241_vm0, %v193_v11, %v220_v10  ;;  %v345_v8 = vld [vmem:[%s1186_s1 + $0x30] sm:$0xff]  ;;  %v346_v9 = vld [vmem:[%s1186_s1 + $0x38] sm:$0xff] }
  0xad   : > { %250 = vadd.xlane.f32.xlu0 %v242_v12  ;;  %v669_v10 = vpack.c.bf16 %v346_v9, %v345_v8 }
  0xaf   : > { %v226_v15 = vpop.permute.xlu0 %225  ;;  %v228_v16 = vpop.permute.xlu1 %227  ;;  %670 = vmatprep.subr.bf16.mxu0 %v669_v10  ;;  %692 = vmatprep.subr.bf16.mxu1 %v669_v10 }
  0xb0   : > { %v246_v18 = vsel %vm241_vm0, %v196_v13, %v226_v15  ;;  %v247_v20 = vsel %vm241_vm0, %v197_v17, %v228_v16  ;;  %672 = vmatpush3.bf16.msra.mxu0 %v669_v10  ;;  %v348_v13 = vld [vmem:[%s1186_s1 + $0x48] sm:$0xff]  ;;  %700 = vmatpush3.bf16.msra.mxu1 %v669_v10  ;;  %v349_v15 = vld [vmem:[%s1186_s1 + $0x50] sm:$0xff]  ;;  %v350_v16 = vld [vmem:[%s1186_s1 + $0x58] sm:$0xff] }
  0xb1   : > { %258 = vadd.xlane.f32.xlu1 %v246_v18  ;;  %252 = vadd.xlane.f32.xlu0 %v243_v14  ;;  %v677_v17 = vpack.c.bf16 %v350_v16, %v349_v15 }
  0xb3   : > { %v222_v21 = vpop.permute.xlu0 %221  ;;  %v230_v22 = vpop.permute.xlu1 %229 }
  0xb4   : > { %v244_v24 = vsel %vm241_vm0, %v194_v19, %v222_v21  ;;  %v248_v26 = vsel %vm241_vm0, %v198_v23, %v230_v22  ;;  %v352_v19 = vld [vmem:[%s1186_s1 + $0x68] sm:$0xff]  ;;  %v353_v21 = vld [vmem:[%s1186_s1 + $0x70] sm:$0xff]  ;;  %v354_v22 = vld [vmem:[%s1186_s1 + $0x78] sm:$0xff] }
  0xb5   : > { %254 = vadd.xlane.f32.xlu1 %v244_v24  ;;  %260 = vadd.xlane.f32.xlu0 %v247_v20  ;;  %v685_v23 = vpack.c.bf16 %v354_v22, %v353_v21 }
  0xb7   : > { %v224_v27 = vpop.permute.xlu0 %223  ;;  %v232_v28 = vpop.permute.xlu1 %231 }
  0xb8   : > { %v245_v30 = vsel %vm241_vm0, %v195_v25, %v224_v27  ;;  %v249_v31 = vsel %vm241_vm0, %v199_v29, %v232_v28 }
  0xb9   : > { %256 = vadd.xlane.f32.xlu1 %v245_v30  ;;  %262 = vadd.xlane.f32.xlu0 %v248_v26 }
  0xbd   : > { %264 = vadd.xlane.f32.xlu0 %v249_v31 }
 0x13a   : > { %v251_v41 = vpop.xlane.xlu0 %250 }
 0x13b   : > { %v267_v42 = vmul.f32 0.0078125, %v251_v41 }
 0x13d   : > { %v1053_v43 = vsub.f32 %v242_v12, %v267_v42  ;;  %v347_v12 = vld [vmem:[%s1186_s1 + $0x40] sm:$0xff] }
 0x13e   : > { %v259_v44 = vpop.xlane.xlu1 %258  ;;  %v253_v45 = vpop.xlane.xlu0 %252 }
 0x13f   : > { %v271_v46 = vmul.f32 0.0078125, %v259_v44  ;;  %v268_v47 = vmul.f32 0.0078125, %v253_v45  ;;  %v283_v48 = vmul.f32 %v1053_v43, %v1053_v43 }
 0x141   : > { %v1057_v49 = vsub.f32 %v246_v18, %v271_v46  ;;  %v1059_v50 = vsub.f32 %v243_v14, %v268_v47  ;;  %291 = vadd.xlane.f32.xlu1 %v283_v48  ;;  %v673_v14 = vpack.c.bf16 %v348_v13, %v347_v12  ;;  %v351_v18 = vld [vmem:[%s1186_s1 + $0x60] sm:$0xff] }
 0x142   : > { %v255_v51 = vpop.xlane.xlu1 %254  ;;  %v261_v52 = vpop.xlane.xlu0 %260 }
 0x143   : > { %v269_v53 = vmul.f32 0.0078125, %v255_v51  ;;  %v272_v54 = vmul.f32 0.0078125, %v261_v52  ;;  %v287_v55 = vmul.f32 %v1057_v49, %v1057_v49  ;;  %v284_v56 = vmul.f32 %v1059_v50, %v1059_v50  ;;  %674 = vmatprep.subr.bf16.mxu0 %v673_v14  ;;  %693 = vmatprep.subr.bf16.mxu1 %v673_v14 }
 0x144   : > { %676 = vmatpush3.bf16.msra.mxu0 %v673_v14  ;;  %701 = vmatpush3.bf16.msra.mxu1 %v673_v14 }
 0x145   : > { %v1065_v57 = vsub.f32 %v244_v24, %v269_v53  ;;  %v1067_v58 = vsub.f32 %v247_v20, %v272_v54  ;;  %299 = vadd.xlane.f32.xlu0 %v287_v55  ;;  %293 = vadd.xlane.f32.xlu1 %v284_v56  ;;  %v681_v20 = vpack.c.bf16 %v352_v19, %v351_v18 }
 0x146   : > { %v257_v59 = vpop.xlane.xlu1 %256  ;;  %v263_v60 = vpop.xlane.xlu0 %262  ;;  %678 = vmatprep.subr.bf16.mxu0 %v677_v17  ;;  %694 = vmatprep.subr.bf16.mxu1 %v677_v17 }
 0x147   : > { %v270_v61 = vmul.f32 0.0078125, %v257_v59  ;;  %v273_v62 = vmul.f32 0.0078125, %v263_v60  ;;  %v285_v63 = vmul.f32 %v1065_v57, %v1065_v57  ;;  %v288_v0 = vmul.f32 %v1067_v58, %v1067_v58 }
 0x148   : > { %680 = vmatpush3.bf16.msra.mxu0 %v677_v17  ;;  %702 = vmatpush3.bf16.msra.mxu1 %v677_v17 }
 0x149   : > { %v1073_v1 = vsub.f32 %v245_v30, %v270_v61  ;;  %v1075_v2 = vsub.f32 %v248_v26, %v273_v62  ;;  %295 = vadd.xlane.f32.xlu1 %v285_v63  ;;  %301 = vadd.xlane.f32.xlu0 %v288_v0 }
 0x14a   : > { %v265_v3 = vpop.xlane.xlu0 %264  ;;  %682 = vmatprep.subr.bf16.mxu0 %v681_v20  ;;  %695 = vmatprep.subr.bf16.mxu1 %v681_v20 }
 0x14b   : > { %v274_v4 = vmul.f32 0.0078125, %v265_v3  ;;  %v286_v5 = vmul.f32 %v1073_v1, %v1073_v1  ;;  %v289_v6 = vmul.f32 %v1075_v2, %v1075_v2 }
 0x14c   : > { %684 = vmatpush3.bf16.msra.mxu0 %v681_v20  ;;  %703 = vmatpush3.bf16.msra.mxu1 %v681_v20 }
 0x14d   : > { %v1081_v7 = vsub.f32 %v249_v31, %v274_v4  ;;  %297 = vadd.xlane.f32.xlu1 %v286_v5  ;;  %303 = vadd.xlane.f32.xlu0 %v289_v6 }
 0x14e   : > { %686 = vmatprep.subr.bf16.mxu0 %v685_v23  ;;  %696 = vmatprep.subr.bf16.mxu1 %v685_v23 }
 0x14f   : > { %v290_v11 = vmul.f32 %v1081_v7, %v1081_v7 }
 0x150   : > { %688 = vmatpush3.bf16.msra.mxu0 %v685_v23  ;;  %704 = vmatpush3.bf16.msra.mxu1 %v685_v23 }
 0x151   : > { %305 = vadd.xlane.f32.xlu0 %v290_v11 }
 0x1ce   : > { %v292_v24 = vpop.xlane.xlu1 %291 }
 0x1cf   : > { %v307_v25 = vmul.f32 0.0078125, %v292_v24 }
 0x1d1   : > { %v315_v26 = vadd.f32 1e-05, %v307_v25 }
 0x1d2   : > { %v294_v27 = vpop.xlane.xlu1 %293  ;;  %v300_v28 = vpop.xlane.xlu0 %299 }
 0x1d3   : > { %756 = vrsqrt.f32 %v315_v26  ;;  %v308_v29 = vmul.f32 0.0078125, %v294_v27  ;;  %v311_v30 = vmul.f32 0.0078125, %v300_v28 }
 0x1d5   : > { %v316_v31 = vadd.f32 1e-05, %v308_v29  ;;  %v319_v32 = vadd.f32 1e-05, %v311_v30 }
 0x1d6   : > { %v296_v33 = vpop.xlane.xlu1 %295  ;;  %v302_v34 = vpop.xlane.xlu0 %301 }
 0x1d7   : > { %758 = vrsqrt.f32 %v316_v31  ;;  %v309_v35 = vmul.f32 0.0078125, %v296_v33  ;;  %v312_v36 = vmul.f32 0.0078125, %v302_v34 }
 0x1d8   : > { %760 = vrsqrt.f32 %v319_v32 }
 0x1d9   : > { %v317_v37 = vadd.f32 1e-05, %v309_v35  ;;  %v320_v38 = vadd.f32 1e-05, %v312_v36 }
 0x1da   : > { %v298_v39 = vpop.xlane.xlu1 %297  ;;  %v304_v40 = vpop.xlane.xlu0 %303 }
 0x1db   : > { %762 = vrsqrt.f32 %v317_v37  ;;  %v310_v41 = vmul.f32 0.0078125, %v298_v39  ;;  %v313_v42 = vmul.f32 0.0078125, %v304_v40 }
 0x1dc   : > { %764 = vrsqrt.f32 %v320_v38 }
 0x1dd   : > { %v757_v44 = vpop.eup %756  ;;  %v318_v45 = vadd.f32 1e-05, %v310_v41  ;;  %v321_v46 = vadd.f32 1e-05, %v313_v42 }
 0x1de   : > { %v306_v47 = vpop.xlane.xlu0 %305  ;;  %v331_v48 = vmul.f32 %v757_v44, %v1053_v43 }
 0x1df   : > { %766 = vrsqrt.f32 %v318_v45  ;;  %v314_v51 = vmul.f32 0.0078125, %v306_v47 }
 0x1e0   : > { %768 = vrsqrt.f32 %v321_v46  ;;  %645 = vmatprep.mubr.f32.mxu0 %v331_v48 }
 0x1e1   : > { %v759_v52 = vpop.eup %758  ;;  %v322_v53 = vadd.f32 1e-05, %v314_v51 }
 0x1e2   : > { %v761_v54 = vpop.eup %760  ;;  %v332_v55 = vmul.f32 %v759_v52, %v1059_v50 }
 0x1e3   : > { %770 = vrsqrt.f32 %v322_v53  ;;  %v335_v56 = vmul.f32 %v761_v54, %v1057_v49 }
 0x1e4   : > { %646 = vmatmul.mubr.f32.vlgmr.msra.gmra.mrb[0].mxu0 %v332_v55 }
 0x1e5   : > { %v763_v59 = vpop.eup %762  ;;  %651 = vmatprep.mubr.f32.mxu1 %v335_v56 }
 0x1e6   : > { %v765_v60 = vpop.eup %764  ;;  %v333_v61 = vmul.f32 %v763_v59, %v1065_v57  ;;  %v580_v57 = vld [vmem:[%s1187_s2] ss:$0 sm:$0xff] }
 0x1e7   : > { %v336_v43 = vmul.f32 %v765_v60, %v1067_v58 }
 0x1e8   : > { %648 = vmatprep.mubr.f32.mxu0 %v333_v61 }
 0x1e9   : > { %v767_v62 = vpop.eup %766  ;;  %652 = vmatmul.mubr.f32.vlgmr.msra.gmra.mrb[0].mxu1 %v336_v43 }
 0x1ea   : > { %v769_v63 = vpop.eup %768  ;;  %v334_v0 = vmul.f32 %v767_v62, %v1073_v1 }
 0x1eb   : > { %v337_v50 = vmul.f32 %v769_v63, %v1075_v2 }
 0x1ec   : > { %649 = vmatmul.mubr.f32.gmra.mrb[2].mxu0 %v334_v0 }
 0x1ed   : > { %v771_v3 = vpop.eup %770  ;;  %654 = vmatprep.mubr.f32.mxu1 %v337_v50 }
 0x1ee   : > { %v338_v49 = vmul.f32 %v771_v3, %v1081_v7 }
 0x1f0   : > { %655 = vmatmul.mubr.f32.gmra.mrb[2].mxu1 %v338_v49 }
 0x2b7   : > { %v647_v58 = vpop.f32.mrb[0].mxu0 }
 0x2b8   : > { %v434_v4 = vadd.f32 %v647_v58, %v580_v57  ;;  %v428_v5 = vpop.f32.mrb[1].mxu0 }
 0x2b9   : > { %v429_v6 = vadd.f32 %v580_v57, %v428_v5 }
 0x2ba   : > { %468 = vst.msk [vmem:[%s189_s6 + $0x8] sm:$0xff] %vm241_vm0, %v434_v4 }
 0x2bb   : > { %467 = vst.msk [vmem:[%s189_s6] sm:$0xff] %vm241_vm0, %v429_v6 }
 0x2bc   : > { %v653_v1 = vpop.f32.mrb[0].mxu1 }
 0x2bd   : > { %v454_v2 = vadd.f32 %v653_v1, %v580_v57  ;;  %v448_v8 = vpop.f32.mrb[1].mxu1 }
 0x2be   : > { %v449_v7 = vadd.f32 %v580_v57, %v448_v8 }
 0x2bf   : > { %472 = vst.msk [vmem:[%s189_s6 + $0x28] sm:$0xff] %vm241_vm0, %v454_v2  ;;  %v650_v9 = vpop.f32.mrb[2].mxu0 }
 0x2c0   : > { %471 = vst.msk [vmem:[%s189_s6 + $0x20] sm:$0xff] %vm241_vm0, %v449_v7  ;;  %v444_v10 = vadd.f32 %v650_v9, %v580_v57  ;;  %v438_v11 = vpop.f32.mrb[3].mxu0 }
 0x2c1   : > { %v439_v12 = vadd.f32 %v580_v57, %v438_v11 }
 0x2c2   : > { %470 = vst.msk [vmem:[%s189_s6 + $0x18] sm:$0xff] %vm241_vm0, %v444_v10 }
 0x2c3   : > { %469 = vst.msk [vmem:[%s189_s6 + $0x10] sm:$0xff] %vm241_vm0, %v439_v12  ;;  %v656_v13 = vpop.f32.mrb[2].mxu1 }
 0x2c4   : > { %v464_v14 = vadd.f32 %v656_v13, %v580_v57  ;;  %v458_v15 = vpop.f32.mrb[3].mxu1 }
 0x2c5   : > { %v459_v16 = vadd.f32 %v580_v57, %v458_v15 }
 0x2c6   : > { %474 = vst.msk [vmem:[%s189_s6 + $0x38] sm:$0xff] %vm241_vm0, %v464_v14 }
 0x2c7   : > { %473 = vst.msk [vmem:[%s189_s6 + $0x30] sm:$0xff] %vm241_vm0, %v459_v16 }
 0x2c8   : > { %815 = shalt.err (!%p812_p2)
}
 0x2c9   : > { %s816_s29 = scalar_lea.hbm %s1137_s20, 1024  ;;  %s820_s10 = scalar_lea.hbm %s1188_s3, 2048 }
 0x2ca   : > { %p817_p4 = scmp.ne.s32.totalorder %s1137_s20, %s816_s29  ;;  %p821_p9 = scmp.lt.u32.totalorder %s1137_s20, %s1188_s3 }
 0x2cb   : > { %p822_p1 = scmp.lt.u32.totalorder %s820_s10, %s816_s29  ;;  %p824_p6 = scmp.lt.u32.totalorder %s816_s29, %s1137_s20 }
 0x2cc   : > { %p818_p5 = pnand %p817_p4, %p1195_p11 }
 0x2cd   : > { %p823_p3 = por %p822_p1, %p821_p9 }
 0x2ce   : > { %p819_p7 = pneg %p818_p5 }
 0x2cf   : > { %p825_p12 = por %p824_p6, %p823_p3 }
 0x2d1   : > { %p826_p13 = pnand %p825_p12, %p819_p7 }
 0x2d3   : > { %829 = shalt.err (!%p826_p13)
}
 0x2d4   : > { %s875_s23 = smov 128   ;;  %s876_s6 = smov 8  }
 0x2d5   : > { %707 = dma.vmem_to_hbm [thread:$0]  (%p1195_p11), %s1139_s8, 1024, %s1137_s20, %s476_s16, %s875_s23, %s875_s23, %s876_s6  }
 0x2d6 PF: > { %s504_s7 = sand.u32 1, %s856_s12   ;;  %p1196_p8 = scmp.ne.s32.totalorder %s1193_s25, 0 }
 0x2d7   : > { %p1197_p10 = scmp.ge.s32.totalorder %s868_s15, 2  ;;  %s505_s17 = scalar_lea.sflag [#allocation4], %s504_s7 }
 0x2d9   : > { %p714_p0 = pnand %p1197_p10, %p1196_p8 }
 0x2db   : > { %851 = dma.done.wait (!%p714_p0), %s505_s17, 1024  }
 0x2dc   : > { %853 = vsyncadd (!%p714_p0), %s505_s17, 4294966272  ;;  %p16_p2 = scmp.ge.s32.totalorder %s922_s18, 4   ;;  %s1198_s12 = smov %s860_s13 }
 0x2dd   : > { %s1199_s13 = smov %s864_s14  ;;  %s1200_s14 = smov %s934_s21 }
 0x2de   : > { %s1201_s15 = smov %s922_s18  ;;  %18 = sbr.rel (!%p16_p2) target bundleno = 5 (0x5), region = 78 }
 0x2e5   :  { %510 = vsyncpa [#allocation3], 1 }
 0x2e6   :  { %512 = vsyncpa [#allocation3 + $0x1], 1 }
 0x2e7   :  { %513 = vsyncpa [#allocation4], 1 }
 0x2e8   :  { %515 = vsyncpa [#allocation4 + $0x1], 1 }

</bundles_post_ra>
